<compile_context>
chip_gen: v5e
topology: v5e:2x2
jax: 0.10.0
libtpu: 0.0.40
codegen_flags: <defaults>
</compile_context>

<pallas_src>
import math

import jax
import jax.numpy as jnp
from jax import lax
from jax.experimental import pallas as pl
from jax.experimental.pallas import tpu as pltpu


def _round_up(x: int, m: int) -> int:
    return ((x + m - 1) // m) * m


def _sublane_granularity(dtype) -> int:
    itemsize = jnp.dtype(dtype).itemsize
    if itemsize >= 4:
        return 8
    if itemsize == 2:
        return 16
    return 32


def _choose_tile(base: int, target: int, gran: int) -> int:
    """Tile size (multiple of gran, <= target) minimising padding of `base`;
    prefers larger tiles on ties."""
    base = max(_round_up(base, gran), gran)
    limit = min(max(target, gran), base)
    best_t, best_pad = gran, _round_up(base, gran)
    t = gran
    while t <= limit:
        pad = _round_up(base, t)
        if pad < best_pad or (pad == best_pad and t >= best_t):
            best_t, best_pad = t, pad
        t += gran
    return best_t


def _shrink(t: int, gran: int) -> int:
    return max(gran, (t // 2) // gran * gran)


def _make_kernel(apply_exp: bool, has_bias: bool, multi_k: bool):
    def kernel(*refs):
        idx = 0
        x_ref = refs[idx]; idx += 1
        w_ref = refs[idx]; idx += 1
        b_ref = None
        if has_bias:
            b_ref = refs[idx]; idx += 1
        o_ref = refs[idx]; idx += 1
        acc_ref = refs[idx] if multi_k else None

        w = w_ref[...]
        if apply_exp:
            # exp on the EUP in f32 (free slot under an MXU-bound matmul),
            # cast back so bf16 inputs keep the bf16 MXU path.
            w = jnp.exp(w.astype(jnp.float32)).astype(x_ref.dtype)

        # x (tm, tk) contracted against W (tn, tk) in its original (out, in)
        # layout -> (tm, tn), accumulated in f32 on the MXU.
        part = lax.dot_general(
            x_ref[...], w,
            dimension_numbers=(((1,), (1,)), ((), ())),
            preferred_element_type=jnp.float32)

        if multi_k:
            k = pl.program_id(2)

            @pl.when(k == 0)
            def _():
                acc_ref[...] = jnp.zeros_like(acc_ref)

            acc_ref[...] += part

            @pl.when(k == pl.num_programs(2) - 1)
            def _():
                res = acc_ref[...]
                if has_bias:
                    res = res + b_ref[...].astype(jnp.float32)
                o_ref[...] = res.astype(o_ref.dtype)
        else:
            res = part
            if has_bias:
                res = res + b_ref[...].astype(jnp.float32)
            o_ref[...] = res.astype(o_ref.dtype)

    return kernel


def positive_linear(x, weight, bias=None, *,
                    tm_target=None, tn_target=None, tk_target=None):
    """x: (..., in_features), weight: (out_features, in_features),
    bias: (out_features,) or None.  Computes x @ exp(W)^T + b."""
    out_f, in_f = weight.shape
    orig_shape = x.shape
    assert orig_shape[-1] == in_f, "last dim of x must equal in_features"
    x2d = x.reshape(-1, in_f)
    B = x2d.shape[0]
    out_dtype = x.dtype
    mm_dtype = x.dtype
    has_bias = bias is not None

    # --- generation-aware tile targets & VMEM budget ---
    try:
        info = pltpu.get_tpu_info()
        vmem_cap = int(getattr(info, "vmem_capacity_bytes", 0)) or (64 << 20)
    except Exception:  # not on TPU / API mismatch: be conservative
        vmem_cap = 64 << 20
    if vmem_cap >= (100 << 20):         # v5e / v6e: 128 MiB VMEM
        dm, dn, dk = 2048, 1024, 1024
    else:                               # v7x: 64 MiB per TensorCore
        dm, dn, dk = 1024, 1024, 512
    tm_target = dm if tm_target is None else tm_target
    tn_target = dn if tn_target is None else tn_target
    tk_target = dk if tk_target is None else tk_target
    vmem_cap_budget = int(vmem_cap * 0.75)   # ~96 MiB v5e/v6e, ~48 MiB v7x

    gran_m = _sublane_granularity(mm_dtype)
    gran_n = 128
    gran_k = 128

    m_base = _round_up(B, gran_m)
    n_base = _round_up(out_f, gran_n)
    k_base = _round_up(in_f, gran_k)

    tm = _choose_tile(m_base, tm_target, gran_m)
    tn = _choose_tile(n_base, tn_target, gran_n)
    tk = _choose_tile(k_base, tk_target, gran_k)

    x_item = jnp.dtype(mm_dtype).itemsize
    w_item = jnp.dtype(mm_dtype).itemsize
    b_item = jnp.dtype(bias.dtype).itemsize if has_bias else 0
    o_item = jnp.dtype(out_dtype).itemsize

    def working_set(tm_, tn_, tk_, w_bufs=2, with_acc=True):
        ws = (2 * tm_ * tk_ * x_item
              + w_bufs * tn_ * tk_ * w_item
              + 2 * tm_ * tn_ * o_item)
        if with_acc:
            ws += tm_ * tn_ * 4
        if has_bias:
            ws += 2 * tn_ * b_item
        return ws

    budget = int(vmem_cap_budget * 0.9)
    while working_set(tm, tn, tk) > budget:
        if tk > 512 and tk >= 2 * gran_k:
            tk = _shrink(tk, gran_k)
        elif tn >= tm and tn >= 2 * gran_n:
            tn = _shrink(tn, gran_n)
        elif tm >= 2 * gran_m:
            tm = _shrink(tm, gran_m)
        elif tk >= 2 * gran_k:
            tk = _shrink(tk, gran_k)
        else:
            break

    m_pad = _round_up(m_base, tm)
    n_pad = _round_up(n_base, tn)
    k_pad = _round_up(k_base, tk)

    # Guarantee >= 2 blocks on a parallel axis so v7x shards across its 2 TCs.
    if m_pad // tm == 1 and n_pad // tn == 1:
        if n_pad >= 256 and n_pad % 256 == 0:
            tn = n_pad // 2
        elif m_pad >= 2 * gran_m and m_pad % (2 * gran_m) == 0:
            tm = m_pad // 2

    grid_m = m_pad // tm
    grid_n = n_pad // tn
    grid_k = k_pad // tk
    grid = (grid_m, grid_n, grid_k)
    multi_k = grid_k > 1

    # exp(W): hoist to the wrapper (computed once, stored in the matmul dtype)
    # when W tiles are re-read across M blocks; otherwise keep exp in-kernel
    # and skip the extra W-sized HBM round trip.
    apply_exp_in_kernel = (grid_m == 1)
    if apply_exp_in_kernel:
        w_src = weight.astype(mm_dtype)
    else:
        w_src = jnp.exp(weight.astype(jnp.float32)).astype(mm_dtype)

    x_p = x2d if (m_pad == B and k_pad == in_f) else jnp.pad(
        x2d, ((0, m_pad - B), (0, k_pad - in_f)))
    w_p = w_src if (n_pad == out_f and k_pad == in_f) else jnp.pad(
        w_src, ((0, n_pad - out_f), (0, k_pad - in_f)))

    inputs = [x_p, w_p]
    in_specs = [pl.BlockSpec((tm, tk), lambda i, j, k: (i, k))]   # x tile

    # GEMV-like regime: W DMA latency dominates -> request a 3-deep pipeline.
    w_index = lambda i, j, k: (j, k)
    buffered_w = (tm <= 64) and (grid_n * grid_k >= 3)
    if buffered_w:
        try:
            w_spec = pl.BlockSpec((tn, tk), w_index, pipeline_mode=pl.Buffered(3))
        except TypeError:
            w_spec = pl.BlockSpec((tn, tk), w_index)
            buffered_w = False
    else:
        w_spec = pl.BlockSpec((tn, tk), w_index)
    in_specs.append(w_spec)

    if has_bias:
        b_p = bias if n_pad == out_f else jnp.pad(bias, (0, n_pad - out_f))
        inputs.append(b_p.reshape(1, n_pad))
        in_specs.append(pl.BlockSpec((1, tn), lambda i, j, k: (0, j)))  # k-independent

    scratch_shapes = [pltpu.VMEM((tm, tn), jnp.float32)] if multi_k else []

    ws_final = working_set(tm, tn, tk,
                           w_bufs=3 if buffered_w else 2,
                           with_acc=multi_k)
    vmem_limit = int(min(max(int(ws_final * 1.25) + (1 << 20), 8 << 20),
                         vmem_cap_budget))

    cost = pl.CostEstimate(
        flops=2 * m_pad * n_pad * k_pad,
        transcendentals=(n_pad * k_pad) if apply_exp_in_kernel else 0,
        bytes_accessed=(m_pad * k_pad * x_item * grid_n
                        + n_pad * k_pad * w_item * grid_m
                        + (n_pad * b_item * grid_m if has_bias else 0)
                        + m_pad * n_pad * o_item))

    kernel = _make_kernel(apply_exp_in_kernel, has_bias, multi_k)

    out_padded = pl.pallas_call(
        kernel,
        out_shape=jax.ShapeDtypeStruct((m_pad, n_pad), out_dtype),
        grid_spec=pltpu.PrefetchScalarGridSpec(
            num_scalar_prefetch=0,
            grid=grid,
            in_specs=in_specs,
            out_specs=pl.BlockSpec((tm, tn), lambda i, j, k: (i, j)),
            scratch_shapes=scratch_shapes,
        ),
        compiler_params=pltpu.CompilerParams(
            dimension_semantics=("parallel", "parallel", "arbitrary"),
            vmem_limit_bytes=vmem_limit),
        cost_estimate=cost,
    )(*inputs)

    if m_pad != B or n_pad != out_f:
        out_padded = out_padded[:B, :out_f]
    return out_padded.reshape(orig_shape[:-1] + (out_f,))


def init_positive_linear_params(key, in_features, out_features, dtype=jnp.float32):
    """Matches PyTorch reset_parameters: kaiming_uniform_(a=sqrt(5)) for weight
    -> U(-1/sqrt(fan_in), 1/sqrt(fan_in)); same bound for bias."""
    kw, kb = jax.random.split(key)
    bound = 1.0 / math.sqrt(in_features)
    weight = jax.random.uniform(kw, (out_features, in_features),
                                minval=-bound, maxval=bound, dtype=dtype)
    bias = jax.random.uniform(kb, (out_features,),
                              minval=-bound, maxval=bound, dtype=dtype)
    return weight, bias


if __name__ == "__main__":
    key = jax.random.PRNGKey(0)
    k_x, k_p, k_x2 = jax.random.split(key, 3)

    # Small shapes consistent with the module.
    batch, in_features, out_features = 8, 32, 16
    x = jax.random.normal(k_x, (batch, in_features), dtype=jnp.float32)
    weight, bias = init_positive_linear_params(k_p, in_features, out_features)

    out = jax.block_until_ready(positive_linear(x, weight, bias))
    ref = x @ jnp.exp(weight).T + bias
    assert out.shape == (batch, out_features)
    assert jnp.allclose(out, ref, atol=1e-4, rtol=1e-4), (
        float(jnp.max(jnp.abs(out - ref))))

    # No-bias variant (module constructed with bias=False).
    out_nb = jax.block_until_ready(positive_linear(x, weight, None))
    ref_nb = x @ jnp.exp(weight).T
    assert jnp.allclose(out_nb, ref_nb, atol=1e-4, rtol=1e-4)

    # Exercise the multi-block path (hoisted exp(W), K-accumulator, buffered W)
    # by forcing tiny tiles on a slightly larger problem.
    b2, in2, out2 = 40, 300, 200
    x2 = jax.random.normal(k_x2, (b2, in2), dtype=jnp.float32)
    w2, bias2 = init_positive_linear_params(jax.random.PRNGKey(1), in2, out2)
    out2_arr = jax.block_until_ready(
        positive_linear(x2, w2, bias2, tm_target=16, tn_target=128, tk_target=128))
    ref2 = x2 @ jnp.exp(w2).T + bias2
    assert jnp.allclose(out2_arr, ref2, atol=2e-3, rtol=2e-3), (
        float(jnp.max(jnp.abs(out2_arr - ref2))))

    print("KERNEL_OK")
</pallas_src>

<mosaic_0001>
module attributes {stable_mosaic.version = 11 : i64} {
  func.func @kernel(%arg0: i32, %arg1: i32, %arg2: i32, %arg3: memref<8x128xf32, #tpu.memory_space<vmem>>, %arg4: memref<128x128xf32, #tpu.memory_space<vmem>>, %arg5: memref<1x128xf32, #tpu.memory_space<vmem>>, %arg6: memref<8x128xf32, #tpu.memory_space<vmem>>) attributes {dimension_semantics = [#tpu.dimension_semantics<parallel>, #tpu.dimension_semantics<parallel>, #tpu.dimension_semantics<arbitrary>], iteration_bounds = array<i64: 1, 1, 1>, scalar_prefetch = 0 : i64, scratch_operands = 0 : i64, tpu.core_type = #tpu.core_type<tc>, window_params = [{transform_indices = @transform_0, window_bounds = array<i64: 8, 128>}, {transform_indices = @transform_1, window_bounds = array<i64: 128, 128>}, {transform_indices = @transform_2, window_bounds = array<i64: 1, 128>}, {transform_indices = @transform_3, window_bounds = array<i64: 8, 128>}]} {
    %c0 = arith.constant 0 : index
    %c0_0 = arith.constant 0 : index
    %0 = vector.load %arg4[%c0, %c0_0] : memref<128x128xf32, #tpu.memory_space<vmem>>, vector<128x128xf32>
    %1 = math.exp %0 : vector<128x128xf32>
    %c0_1 = arith.constant 0 : index
    %c0_2 = arith.constant 0 : index
    %2 = vector.load %arg3[%c0_1, %c0_2] : memref<8x128xf32, #tpu.memory_space<vmem>>, vector<8x128xf32>
    %cst = arith.constant dense<0.000000e+00> : vector<8x128xf32>
    %3 = tpu.matmul %2, %1, %cst {dimension_numbers = #tpu.dot_dimension_numbers<[1], [1], [0], [0], [0, 0, 1, 0], [], []>} : vector<8x128xf32>, vector<128x128xf32>, vector<8x128xf32> -> vector<8x128xf32>
    %c0_3 = arith.constant 0 : index
    %c0_4 = arith.constant 0 : index
    %4 = vector.load %arg5[%c0_3, %c0_4] : memref<1x128xf32, #tpu.memory_space<vmem>>, vector<1x128xf32>
    %5 = vector.broadcast %4 : vector<1x128xf32> to vector<8x128xf32>
    %6 = arith.addf %3, %5 : vector<8x128xf32>
    %c0_5 = arith.constant 0 : index
    %c0_6 = arith.constant 0 : index
    %7 = vector.load %arg6[%c0_5, %c0_6] : memref<8x128xf32, #tpu.memory_space<vmem>>, vector<8x128xf32>
    tpu.vector_store %arg6[%c0_5, %c0_6], %6 {strides = array<i32>} : memref<8x128xf32, #tpu.memory_space<vmem>>, vector<8x128xf32>,
    return
  }
  func.func @transform_0(%arg0: i32, %arg1: i32, %arg2: i32) -> (i32, i32) {
    %c0_i32 = arith.constant 0 : i32
    return %arg0, %arg2 : i32, i32
  }
  func.func @transform_1(%arg0: i32, %arg1: i32, %arg2: i32) -> (i32, i32) {
    %c0_i32 = arith.constant 0 : i32
    return %arg1, %arg2 : i32, i32
  }
  func.func @transform_2(%arg0: i32, %arg1: i32, %arg2: i32) -> (i32, i32) {
    %c0_i32 = arith.constant 0 : i32
    %c0_i32_0 = arith.constant 0 : i32
    return %c0_i32, %arg1 : i32, i32
  }
  func.func @transform_3(%arg0: i32, %arg1: i32, %arg2: i32) -> (i32, i32) {
    %c0_i32 = arith.constant 0 : i32
    return %arg0, %arg1 : i32, i32
  }
}

</mosaic_0001>

<bundles_post_ra>
// kernel: tpu_custom_call.1
= control target key start
LH: loop header
LB: loop body
LE: loop exit
PB: predicated region body
PF: predicated region fallthrough
CT: control target
= control target key end

     0   :  { %8 = vsyncpa [#allocation3], 0  ;;  %s290_s0 = inlined_call_operand.hbm [shape: f32[8,128], index: 0, kind: input, shape index: {}]   ;;  %s291_s1 = inlined_call_operand.hbm [shape: f32[128,128], index: 1, kind: input, shape index: {}]   ;;  %s292_s2 = inlined_call_operand.vmem [shape: f32[1,128], index: 2, kind: input, shape index: {}]   ;;  %s293_s3 = inlined_call_operand.hbm [shape: f32[8,128], index: 3, kind: output, shape index: {}]  }
   0x1   :  { %9 = vsyncpa [#allocation6], 0 }
   0x2   :  { %10 = vsyncpa [#allocation4], 0  ;;  %s16_s14 = sshll.u32 %s290_s0, 4  ;;  %s253_s15 = smov [#allocation2]   ;;  %s17_s14 = int_to_ptr.hbm [resolvable:$true] %s16_s14 }
   0x3   :  { %s18_s16 = sshll.u32 %s253_s15, 4  ;;  %s26_s19 = sshll.u32 %s291_s1, 4  ;;  %s19_s16 = int_to_ptr.vmem [resolvable:$true] %s18_s16  ;;  %s27_s19 = int_to_ptr.hbm [resolvable:$true] %s26_s19 }
   0x4   :  { %21 = dma.hbm_to_vmem [thread:$0]  %s17_s14, 128, %s19_s16, [#allocation3]  }
   0x5   :  { %s254_s20 = smov [#allocation5]   ;;  %s255_s22 = smov 128  }
   0x6   :  { %s28_s21 = sshll.u32 %s254_s20, 4  ;;  %s256_s23 = smov 8   ;;  %s29_s21 = int_to_ptr.vmem [resolvable:$true] %s28_s21 }
   0x7   :  { %34 = dma.hbm_to_vmem [thread:$0]  %s27_s19, 2048, %s29_s21, [#allocation6], %s255_s22, %s255_s22, %s256_s23  }
   0x8   :  { %247 = dma.done.wait [#allocation3], 128  }
   0x9   :  { %248 = vsyncadd [#allocation3], 4294967168 }
   0xa   :  { %249 = dma.done.wait [#allocation6], 2048  }
   0xb   :  { %250 = vsyncadd [#allocation6], 4294965248  ;;  %v60_v0 = vld [vmem:[#allocation5 + $0x78] sm:$0xff]  ;;  %v59_v1 = vld [vmem:[#allocation5 + $0x70] sm:$0xff]  ;;  %s257_s24 = smov [#allocation7]   ;;  %s126_s28 = sshll.u32 %s293_s3, 4  ;;  %s127_s28 = int_to_ptr.hbm [resolvable:$true] %s126_s28 }
   0xc   :  { %v91_v2 = vmul.f32 1.442695, %v60_v0  ;;  %v89_v3 = vmul.f32 1.442695, %v59_v1  ;;  %v58_v4 = vld [vmem:[#allocation5 + $0x68] sm:$0xff]  ;;  %v57_v6 = vld [vmem:[#allocation5 + $0x60] sm:$0xff] }
   0xd   :  { %v87_v5 = vmul.f32 1.442695, %v58_v4  ;;  %v85_v8 = vmul.f32 1.442695, %v57_v6  ;;  %v56_v9 = vld [vmem:[#allocation5 + $0x58] sm:$0xff]  ;;  %v55_v12 = vld [vmem:[#allocation5 + $0x50] sm:$0xff] }
   0xe   :  { %143 = vpow2.f32 %v91_v2  ;;  %v83_v11 = vmul.f32 1.442695, %v56_v9  ;;  %v81_v14 = vmul.f32 1.442695, %v55_v12  ;;  %v54_v15 = vld [vmem:[#allocation5 + $0x48] sm:$0xff]  ;;  %v53_v18 = vld [vmem:[#allocation5 + $0x40] sm:$0xff] }
   0xf   :  { %145 = vpow2.f32 %v89_v3  ;;  %v79_v17 = vmul.f32 1.442695, %v54_v15  ;;  %v77_v20 = vmul.f32 1.442695, %v53_v18  ;;  %v52_v21 = vld [vmem:[#allocation5 + $0x38] sm:$0xff]  ;;  %v51_v24 = vld [vmem:[#allocation5 + $0x30] sm:$0xff] }
  0x10   :  { %147 = vpow2.f32 %v87_v5  ;;  %v75_v23 = vmul.f32 1.442695, %v52_v21  ;;  %v73_v26 = vmul.f32 1.442695, %v51_v24  ;;  %v50_v27 = vld [vmem:[#allocation5 + $0x28] sm:$0xff]  ;;  %v49_v30 = vld [vmem:[#allocation5 + $0x20] sm:$0xff] }
  0x11   :  { %149 = vpow2.f32 %v85_v8  ;;  %v71_v29 = vmul.f32 1.442695, %v50_v27  ;;  %v69_v32 = vmul.f32 1.442695, %v49_v30  ;;  %v48_v33 = vld [vmem:[#allocation5 + $0x18] sm:$0xff]  ;;  %v47_v36 = vld [vmem:[#allocation5 + $0x10] sm:$0xff] }
  0x12   :  { %151 = vpow2.f32 %v83_v11  ;;  %v67_v35 = vmul.f32 1.442695, %v48_v33  ;;  %v65_v38 = vmul.f32 1.442695, %v47_v36  ;;  %v46_v39 = vld [vmem:[#allocation5 + $0x8] sm:$0xff]  ;;  %v45_v42 = vld [vmem:[#allocation5] sm:$0xff] }
  0x13   :  { %153 = vpow2.f32 %v81_v14  ;;  %v63_v41 = vmul.f32 1.442695, %v46_v39  ;;  %v61_v44 = vmul.f32 1.442695, %v45_v42  ;;  %v93_v48 = vld [vmem:[#allocation2] sm:$0xff]  ;;  %s124_s25 = sshll.u32 %s257_s24, 4  ;;  %s125_s25 = int_to_ptr.vmem [resolvable:$true] %s124_s25 }
  0x14   :  { %v144_v7 = vpop.eup %143  ;;  %155 = vpow2.f32 %v79_v17  ;;  %v142_v49 = vld [vmem:[%s292_s2] ss:$0 sm:$0xff] }
  0x15   :  { %98 = vmatpush.xpose.msra.mxu0 %v144_v7  ;;  %v146_v10 = vpop.eup %145  ;;  %157 = vpow2.f32 %v77_v20 }
  0x16   :  { %v148_v13 = vpop.eup %147  ;;  %159 = vpow2.f32 %v75_v23 }
  0x17   :  { %v150_v16 = vpop.eup %149  ;;  %161 = vpow2.f32 %v73_v26 }
  0x18   :  { %v152_v19 = vpop.eup %151  ;;  %163 = vpow2.f32 %v71_v29 }
  0x19   :  { %99 = vmatpush.xpose.msra.mxu0 %v146_v10  ;;  %v154_v22 = vpop.eup %153  ;;  %165 = vpow2.f32 %v69_v32 }
  0x1a   :  { %v156_v25 = vpop.eup %155  ;;  %167 = vpow2.f32 %v67_v35 }
  0x1b   :  { %v158_v28 = vpop.eup %157  ;;  %169 = vpow2.f32 %v65_v38 }
  0x1c   :  { %v160_v31 = vpop.eup %159  ;;  %171 = vpow2.f32 %v63_v41 }
  0x1d   :  { %100 = vmatpush.xpose.msra.mxu0 %v148_v13  ;;  %v162_v34 = vpop.eup %161  ;;  %173 = vpow2.f32 %v61_v44 }
  0x1e   :  { %v164_v37 = vpop.eup %163 }
  0x1f   :  { %v166_v40 = vpop.eup %165 }
  0x20   :  { %v168_v43 = vpop.eup %167 }
  0x21   :  { %101 = vmatpush.xpose.msra.mxu0 %v150_v16  ;;  %v170_v45 = vpop.eup %169 }
  0x22   :  { %v172_v46 = vpop.eup %171 }
  0x23   :  { %v174_v47 = vpop.eup %173 }
  0x25   :  { %102 = vmatpush.xpose.msra.mxu0 %v152_v19 }
  0x29   :  { %103 = vmatpush.xpose.msra.mxu0 %v154_v22 }
  0x2d   :  { %104 = vmatpush.xpose.msra.mxu0 %v156_v25 }
  0x31   :  { %105 = vmatpush.xpose.msra.mxu0 %v158_v28 }
  0x35   :  { %106 = vmatpush.xpose.msra.mxu0 %v160_v31 }
  0x39   :  { %107 = vmatpush.xpose.msra.mxu0 %v162_v34 }
  0x3d   :  { %108 = vmatpush.xpose.msra.mxu0 %v164_v37 }
  0x41   :  { %109 = vmatpush.xpose.msra.mxu0 %v166_v40 }
  0x45   :  { %110 = vmatpush.xpose.msra.mxu0 %v168_v43 }
  0x49   :  { %111 = vmatpush.xpose.msra.mxu0 %v170_v45 }
  0x4d   :  { %112 = vmatpush.xpose.msra.mxu0 %v172_v46 }
  0x51   :  { %113 = vmatpush.xpose.msra.mxu0 %v174_v47 }
  0x54   :  { %114 = vmatmul.f32.vlgmr.msra.gmra.mxu0 %v93_v48 }
  0xd1   :  { %v115_v50 = vpop.f32.mrf.mxu0 }
  0xd2   :  { %v116_v51 = vadd.f32 %v142_v49, %v115_v50 }
  0xd4   :  { %118 = vst [vmem:[#allocation7] sm:$0xff] %v116_v51 }
  0xd5   :  { %129 = dma.vmem_to_hbm [thread:$0]  %s125_s25, 128, %s127_s28, [#allocation4]  }
  0xd6   :  { %251 = dma.done.wait [#allocation4], 128  }
  0xd7   :  { %252 = vsyncadd [#allocation4], 4294967168 }
  0xd8   :  { %134 = vsyncpa [#allocation3], 1 }
  0xd9   :  { %135 = vsyncpa [#allocation6], 1 }
  0xda   :  { %136 = vsyncpa [#allocation4], 1 }

</bundles_post_ra>
